<compile_context>
chip_gen: v5e
topology: v5e:2x2
jax: 0.10.0
libtpu: 0.0.40
codegen_flags: <defaults>
</compile_context>

<pallas_src>
import jax
import jax.numpy as jnp
from jax.experimental import pallas as pl
from jax.experimental.pallas import tpu as pltpu


def _round_up(x, m):
    return ((x + m - 1) // m) * m


# ----------------------------------------------------------------------------
# Kernels
# ----------------------------------------------------------------------------
def _linear_kernel_f32out(x_ref, w_ref, b_ref, o_ref):
    """out = x @ W_t + b with f32 output: accumulate directly in o_ref.

    x_ref: [tm, tk]   activation tile
    w_ref: [tk, tn]   pre-transposed weight tile ([hidden, output] layout)
    b_ref: [1,  tn]   bias tile (f32)
    o_ref: [tm, tn]   f32 output tile, resident across the K grid axis
    """
    k = pl.program_id(2)

    @pl.when(k == 0)
    def _():
        # Fold bias into the accumulator init (one pass, stays in f32).
        o_ref[...] = jnp.broadcast_to(b_ref[...], o_ref.shape).astype(o_ref.dtype)

    o_ref[...] += jnp.dot(x_ref[...], w_ref[...],
                          preferred_element_type=jnp.float32)


def _linear_kernel_acc(x_ref, w_ref, b_ref, o_ref, acc_ref):
    """Same, but with an f32 VMEM scratch accumulator (for bf16/narrow outputs)."""
    k = pl.program_id(2)

    @pl.when(k == 0)
    def _():
        acc_ref[...] = jnp.broadcast_to(b_ref[...], acc_ref.shape).astype(jnp.float32)

    acc_ref[...] += jnp.dot(x_ref[...], w_ref[...],
                            preferred_element_type=jnp.float32)

    @pl.when(k == pl.num_programs(2) - 1)
    def _():
        o_ref[...] = acc_ref[...].astype(o_ref.dtype)


# ----------------------------------------------------------------------------
# Tile selection (VMEM-budgeted, generation-safe)
# ----------------------------------------------------------------------------
def _select_tiles(batch, output, hidden, in_bytes, out_bytes, use_acc,
                  vmem_budget=36 * 1024 * 1024):
    """Pick (tm, tn, tk, vmem_limit_bytes).

    Budget (~36 MiB double-buffered working set) is safe on v7x's 64 MiB
    physical VMEM and leaves headroom on v5e/v6e (128 MiB physical) once
    vmem_limit_bytes is raised above the 16/32 MiB scoped defaults.
    """
    # M: for small/medium batch keep the whole batch in one block so the
    # weight matrix streams from HBM exactly once per call.
    tm = _round_up(batch, 8) if batch <= 512 else 512

    pad_n_min = _round_up(output, 128)
    pad_k_min = _round_up(hidden, 128)

    # Start large; 256-multiples match the 256x256 MXU on v6e/v7x (also fine,
    # just coarser, on v5e's 128x128 MXU).
    tn = min(2048, pad_n_min if pad_n_min <= 256 else _round_up(pad_n_min, 256))
    tk = min(2048, pad_k_min if pad_k_min <= 256 else _round_up(pad_k_min, 256))

    # v7x megacore: if M is a single block and N would also be a single block,
    # split N so both TensorCores get work.
    single_m_block = batch <= 512
    if single_m_block and pad_n_min >= 512 and tn >= pad_n_min:
        tn = max(256, _round_up((pad_n_min + 1) // 2, 256))

    def footprint(tn_, tk_):
        x_buf = 2 * tm * tk_ * in_bytes          # double-buffered activations
        w_buf = 2 * tk_ * tn_ * in_bytes         # double-buffered weight tile
        b_buf = 2 * tn_ * 4                      # bias tile
        o_buf = 2 * tm * tn_ * out_bytes         # output tile (resident over K)
        a_buf = tm * tn_ * 4 if use_acc else 0   # f32 scratch accumulator
        return x_buf + w_buf + b_buf + o_buf + a_buf

    # Shrink the fatter of tn/tk until the working set fits the budget.
    for _ in range(32):
        if footprint(tn, tk) <= vmem_budget or (tn <= 128 and tk <= 128):
            break
        if tk >= tn and tk > 128:
            tk = max(128, (tk // 2 + 127) // 128 * 128)
        elif tn > 128:
            tn = max(128, (tn // 2 + 127) // 128 * 128)
        else:
            tk = max(128, (tk // 2 + 127) // 128 * 128)

    # Raise scoped VMEM above the v5e/v6e defaults (16/32 MiB) but stay well
    # under v7x's 64 MiB physical VMEM.
    vmem_limit = int(min(max(footprint(tn, tk) * 1.25, 32 * 1024 * 1024),
                         48 * 1024 * 1024))
    return tm, tn, tk, vmem_limit


# ----------------------------------------------------------------------------
# Parameter prep (one-time per weight; hoist to model init/load in production)
# ----------------------------------------------------------------------------
def _prepare_params(weight, bias, tn, tk, compute_dtype):
    """Transpose weight to [hidden, output] (=[K, N]) and pad to tile multiples."""
    output, hidden = weight.shape
    pad_n = _round_up(output, tn)
    pad_k = _round_up(hidden, tk)

    w_t = weight.T.astype(compute_dtype)                  # [K, N]
    if pad_k != hidden or pad_n != output:
        w_t = jnp.pad(w_t, ((0, pad_k - hidden), (0, pad_n - output)))

    b = bias.astype(jnp.float32)
    if pad_n != output:
        b = jnp.pad(b, (0, pad_n - output))
    return w_t, b.reshape(1, pad_n), pad_n, pad_k


# ----------------------------------------------------------------------------
# Pallas linear
# ----------------------------------------------------------------------------
def _linear_pallas(x, w_t, b2d, batch, output, hidden,
                   tm, tn, tk, out_dtype, vmem_limit, use_acc):
    pad_k, pad_n = w_t.shape
    pad_m = _round_up(batch, tm)

    # Only x may need a per-call pad: K tail must be zero for the reduction to
    # be exact; M pad is at most tm-1 rows (<= 7 for the small-batch path).
    if pad_m != batch or pad_k != hidden:
        x = jnp.pad(x, ((0, pad_m - batch), (0, pad_k - hidden)))

    grid = (pad_m // tm, pad_n // tn, pad_k // tk)

    kernel = _linear_kernel_acc if use_acc else _linear_kernel_f32out
    scratch = [pltpu.VMEM((tm, tn), jnp.float32)] if use_acc else []

    out_padded = pl.pallas_call(
        kernel,
        out_shape=jax.ShapeDtypeStruct((pad_m, pad_n), out_dtype),
        grid_spec=pltpu.PrefetchScalarGridSpec(
            num_scalar_prefetch=0,
            grid=grid,
            in_specs=[
                # activations: [tm, tk] tile at (i, k)
                pl.BlockSpec((tm, tk), lambda i, j, k: (i, k)),
                # pre-transposed weight [K, N]: [tk, tn] tile at (k, j)
                # (sweep pipeline_mode=pl.Buffered(3) here if DMA-exposed)
                pl.BlockSpec((tk, tn), lambda i, j, k: (k, j)),
                # bias: [1, tn] tile at (0, j)
                pl.BlockSpec((1, tn), lambda i, j, k: (0, j)),
            ],
            out_specs=pl.BlockSpec((tm, tn), lambda i, j, k: (i, j)),
            scratch_shapes=scratch,
        ),
        compiler_params=pltpu.CompilerParams(
            # M/N shard across TensorCores; K is the carried reduction.
            dimension_semantics=("parallel", "parallel", "arbitrary"),
            vmem_limit_bytes=vmem_limit),
    )(x, w_t, b2d)

    if pad_m == batch and pad_n == output:
        return out_padded
    return out_padded[:batch, :output]


def strategy_module_forward(x, weight, bias, *, compute_dtype=None,
                            force_pallas=False):
    """Equivalent to torch.nn.Linear(hidden, output)(x).

    x:      [batch, hidden]
    weight: [output, hidden]  (PyTorch layout)
    bias:   [output]
    compute_dtype: optionally run the MXU in bf16 (f32 accumulation kept).
    """
    batch, hidden = x.shape
    output, hidden_w = weight.shape
    assert hidden_w == hidden, "weight/input hidden-dim mismatch"

    out_dtype = x.dtype
    cdt = jnp.dtype(compute_dtype) if compute_dtype is not None else jnp.dtype(x.dtype)

    # Tiny-shape fast path: pallas_call launch + DMA setup dominates; let XLA
    # handle it (or fuse into a neighboring kernel in a real model).
    if not force_pallas and batch * output * hidden <= 8 * 128 * 128:
        return (x @ weight.T + bias).astype(out_dtype)

    use_acc = jnp.dtype(out_dtype) != jnp.dtype(jnp.float32)
    tm, tn, tk, vmem_limit = _select_tiles(
        batch, output, hidden, cdt.itemsize, jnp.dtype(out_dtype).itemsize, use_acc)

    # TODO(synk): in a real model, hoist _prepare_params to parameter-load time
    # so the transpose/pad is a true one-time cost.
    w_t, b2d, _, _ = _prepare_params(weight, bias, tn, tk, cdt)

    return _linear_pallas(x.astype(cdt), w_t, b2d, batch, output, hidden,
                          tm, tn, tk, out_dtype, vmem_limit, use_acc)


if __name__ == "__main__":
    batch, hidden_size, output_size = 2, 32, 16

    key = jax.random.PRNGKey(0)
    kx, kw, kb = jax.random.split(key, 3)

    x = jax.random.normal(kx, (batch, hidden_size), dtype=jnp.float32)
    # Deterministic params mimicking nn.Linear shapes/init bounds.
    bound = 1.0 / (hidden_size ** 0.5)
    weight = jax.random.uniform(kw, (output_size, hidden_size),
                                minval=-bound, maxval=bound, dtype=jnp.float32)
    bias = jax.random.uniform(kb, (output_size,),
                              minval=-bound, maxval=bound, dtype=jnp.float32)

    # Force the Pallas path so the kernel itself is exercised at the toy size.
    out = strategy_module_forward(x, weight, bias, force_pallas=True)
    jax.block_until_ready(out)

    ref = x @ weight.T + bias
    assert out.shape == (batch, output_size)
    assert jnp.allclose(out, ref, atol=1e-5, rtol=1e-5)

    print("KERNEL_OK")
</pallas_src>

<mosaic_0001>
module attributes {stable_mosaic.version = 11 : i64} {
  func.func @_linear_kernel_f32out(%arg0: i32, %arg1: i32, %arg2: i32, %arg3: memref<8x128xf32, #tpu.memory_space<vmem>>, %arg4: memref<128x128xf32, #tpu.memory_space<vmem>>, %arg5: memref<1x128xf32, #tpu.memory_space<vmem>>, %arg6: memref<8x128xf32, #tpu.memory_space<vmem>>) attributes {dimension_semantics = [#tpu.dimension_semantics<parallel>, #tpu.dimension_semantics<parallel>, #tpu.dimension_semantics<arbitrary>], iteration_bounds = array<i64: 1, 1, 1>, scalar_prefetch = 0 : i64, scratch_operands = 0 : i64, tpu.core_type = #tpu.core_type<tc>, window_params = [{transform_indices = @transform_0, window_bounds = array<i64: 8, 128>}, {transform_indices = @transform_1, window_bounds = array<i64: 128, 128>}, {transform_indices = @transform_2, window_bounds = array<i64: 1, 128>}, {transform_indices = @transform_3, window_bounds = array<i64: 8, 128>}]} {
    %c0_i32 = arith.constant 0 : i32
    %0 = arith.cmpi eq, %arg2, %c0_i32 : i32
    %1 = arith.extui %0 : i1 to i32
    %c0_i32_0 = arith.constant 0 : i32
    %2 = arith.cmpi ne, %1, %c0_i32_0 : i32
    scf.if %2 {
      %c0_8 = arith.constant 0 : index
      %c0_9 = arith.constant 0 : index
      %9 = vector.load %arg5[%c0_8, %c0_9] : memref<1x128xf32, #tpu.memory_space<vmem>>, vector<1x128xf32>
      %10 = vector.shape_cast %9 : vector<1x128xf32> to vector<1x128xf32>
      %11 = vector.broadcast %10 : vector<1x128xf32> to vector<8x128xf32>
      %c0_10 = arith.constant 0 : index
      %c0_11 = arith.constant 0 : index
      %12 = vector.load %arg6[%c0_10, %c0_11] : memref<8x128xf32, #tpu.memory_space<vmem>>, vector<8x128xf32>
      tpu.vector_store %arg6[%c0_10, %c0_11], %11 {strides = array<i32>} : memref<8x128xf32, #tpu.memory_space<vmem>>, vector<8x128xf32>,
    } else {
    }
    %c0 = arith.constant 0 : index
    %c0_1 = arith.constant 0 : index
    %3 = vector.load %arg6[%c0, %c0_1] : memref<8x128xf32, #tpu.memory_space<vmem>>, vector<8x128xf32>
    %c0_2 = arith.constant 0 : index
    %c0_3 = arith.constant 0 : index
    %4 = vector.load %arg3[%c0_2, %c0_3] : memref<8x128xf32, #tpu.memory_space<vmem>>, vector<8x128xf32>
    %c0_4 = arith.constant 0 : index
    %c0_5 = arith.constant 0 : index
    %5 = vector.load %arg4[%c0_4, %c0_5] : memref<128x128xf32, #tpu.memory_space<vmem>>, vector<128x128xf32>
    %cst = arith.constant dense<0.000000e+00> : vector<8x128xf32>
    %6 = tpu.matmul %4, %5, %cst {dimension_numbers = #tpu.dot_dimension_numbers<[1], [0], [0], [1], [0, 0, 1, 1], [], []>} : vector<8x128xf32>, vector<128x128xf32>, vector<8x128xf32> -> vector<8x128xf32>
    %7 = arith.addf %3, %6 : vector<8x128xf32>
    %c0_6 = arith.constant 0 : index
    %c0_7 = arith.constant 0 : index
    %8 = vector.load %arg6[%c0_6, %c0_7] : memref<8x128xf32, #tpu.memory_space<vmem>>, vector<8x128xf32>
    tpu.vector_store %arg6[%c0_6, %c0_7], %7 {strides = array<i32>} : memref<8x128xf32, #tpu.memory_space<vmem>>, vector<8x128xf32>,
    return
  }
  func.func @transform_0(%arg0: i32, %arg1: i32, %arg2: i32) -> (i32, i32) {
    %c0_i32 = arith.constant 0 : i32
    return %arg0, %arg2 : i32, i32
  }
  func.func @transform_1(%arg0: i32, %arg1: i32, %arg2: i32) -> (i32, i32) {
    %c0_i32 = arith.constant 0 : i32
    return %arg2, %arg1 : i32, i32
  }
  func.func @transform_2(%arg0: i32, %arg1: i32, %arg2: i32) -> (i32, i32) {
    %c0_i32 = arith.constant 0 : i32
    %c0_i32_0 = arith.constant 0 : i32
    return %c0_i32, %arg1 : i32, i32
  }
  func.func @transform_3(%arg0: i32, %arg1: i32, %arg2: i32) -> (i32, i32) {
    %c0_i32 = arith.constant 0 : i32
    return %arg0, %arg1 : i32, i32
  }
}

</mosaic_0001>

<bundles_post_ra>
// kernel: tpu_custom_call.1
= control target key start
LH: loop header
LB: loop body
LE: loop exit
PB: predicated region body
PF: predicated region fallthrough
CT: control target
= control target key end

     0   :  { %8 = vsyncpa [#allocation3], 0  ;;  %s233_s0 = inlined_call_operand.hbm [shape: f32[8,128], index: 0, kind: input, shape index: {}]   ;;  %s234_s1 = inlined_call_operand.hbm [shape: f32[128,128], index: 1, kind: input, shape index: {}]   ;;  %s235_s2 = inlined_call_operand.vmem [shape: f32[1,128], index: 2, kind: input, shape index: {}]   ;;  %s236_s3 = inlined_call_operand.hbm [shape: f32[8,128], index: 3, kind: output, shape index: {}]  }
   0x1   :  { %9 = vsyncpa [#allocation6], 0 }
   0x2   :  { %10 = vsyncpa [#allocation4], 0  ;;  %s16_s14 = sshll.u32 %s233_s0, 4  ;;  %s196_s15 = smov [#allocation2]   ;;  %s17_s14 = int_to_ptr.hbm [resolvable:$true] %s16_s14 }
   0x3   :  { %s18_s16 = sshll.u32 %s196_s15, 4  ;;  %s26_s19 = sshll.u32 %s234_s1, 4  ;;  %s19_s16 = int_to_ptr.vmem [resolvable:$true] %s18_s16  ;;  %s27_s19 = int_to_ptr.hbm [resolvable:$true] %s26_s19 }
   0x4   :  { %21 = dma.hbm_to_vmem [thread:$0]  %s17_s14, 128, %s19_s16, [#allocation3]  }
   0x5   :  { %s197_s20 = smov [#allocation5]   ;;  %s198_s22 = smov 128  }
   0x6   :  { %s28_s21 = sshll.u32 %s197_s20, 4  ;;  %s199_s23 = smov 8   ;;  %s29_s21 = int_to_ptr.vmem [resolvable:$true] %s28_s21 }
   0x7   :  { %34 = dma.hbm_to_vmem [thread:$0]  %s27_s19, 2048, %s29_s21, [#allocation6], %s198_s22, %s198_s22, %s199_s23  }
   0x8   :  { %190 = dma.done.wait [#allocation3], 128  }
   0x9   :  { %191 = vsyncadd [#allocation3], 4294967168 }
   0xa   :  { %192 = dma.done.wait [#allocation6], 2048  }
   0xb   :  { %193 = vsyncadd [#allocation6], 4294965248  ;;  %v71_v0 = vld [vmem:[#allocation5 + $0x78] sm:$0xff]  ;;  %v70_v1 = vld [vmem:[#allocation5 + $0x70] sm:$0xff]  ;;  %s200_s24 = smov [#allocation7]   ;;  %s101_s28 = sshll.u32 %s236_s3, 4  ;;  %s102_s28 = int_to_ptr.hbm [resolvable:$true] %s101_s28 }
   0xc   :  { %72 = vmatpush.msra.mxu0 %v71_v0  ;;  %v69_v2 = vld [vmem:[#allocation5 + $0x68] sm:$0xff]  ;;  %v68_v3 = vld [vmem:[#allocation5 + $0x60] sm:$0xff]  ;;  %v67_v4 = vld [vmem:[#allocation5 + $0x58] sm:$0xff]  ;;  %s99_s25 = sshll.u32 %s200_s24, 4  ;;  %s100_s25 = int_to_ptr.vmem [resolvable:$true] %s99_s25 }
   0xd   :  { %v66_v5 = vld [vmem:[#allocation5 + $0x50] sm:$0xff]  ;;  %v65_v6 = vld [vmem:[#allocation5 + $0x48] sm:$0xff]  ;;  %v64_v7 = vld [vmem:[#allocation5 + $0x40] sm:$0xff] }
   0xe   :  { %73 = vmatpush.msra.mxu0 %v70_v1  ;;  %v63_v8 = vld [vmem:[#allocation5 + $0x38] sm:$0xff]  ;;  %v62_v9 = vld [vmem:[#allocation5 + $0x30] sm:$0xff]  ;;  %v61_v10 = vld [vmem:[#allocation5 + $0x28] sm:$0xff] }
   0xf   :  { %v60_v11 = vld [vmem:[#allocation5 + $0x20] sm:$0xff]  ;;  %v59_v12 = vld [vmem:[#allocation5 + $0x18] sm:$0xff]  ;;  %v58_v13 = vld [vmem:[#allocation5 + $0x10] sm:$0xff] }
  0x10   :  { %74 = vmatpush.msra.mxu0 %v69_v2  ;;  %v57_v14 = vld [vmem:[#allocation5 + $0x8] sm:$0xff]  ;;  %v56_v15 = vld [vmem:[#allocation5] sm:$0xff]  ;;  %v55_v16 = vld [vmem:[#allocation2] sm:$0xff] }
  0x11   :  { %v117_v17 = vld [vmem:[%s235_s2] ss:$0 sm:$0xff] }
  0x12   :  { %75 = vmatpush.msra.mxu0 %v68_v3 }
  0x14   :  { %76 = vmatpush.msra.mxu0 %v67_v4 }
  0x16   :  { %77 = vmatpush.msra.mxu0 %v66_v5 }
  0x18   :  { %78 = vmatpush.msra.mxu0 %v65_v6 }
  0x1a   :  { %79 = vmatpush.msra.mxu0 %v64_v7 }
  0x1c   :  { %80 = vmatpush.msra.mxu0 %v63_v8 }
  0x1e   :  { %81 = vmatpush.msra.mxu0 %v62_v9 }
  0x20   :  { %82 = vmatpush.msra.mxu0 %v61_v10 }
  0x22   :  { %83 = vmatpush.msra.mxu0 %v60_v11 }
  0x24   :  { %84 = vmatpush.msra.mxu0 %v59_v12 }
  0x26   :  { %85 = vmatpush.msra.mxu0 %v58_v13 }
  0x28   :  { %86 = vmatpush.msra.mxu0 %v57_v14 }
  0x2a   :  { %87 = vmatpush.msra.mxu0 %v56_v15 }
  0x2b   :  { %88 = vmatmul.f32.vlgmr.msra.gmra.mxu0 %v55_v16 }
  0xa8   :  { %v89_v18 = vpop.f32.mrf.mxu0 }
  0xa9   :  { %v92_v19 = vadd.f32 %v117_v17, %v89_v18 }
  0xab   :  { %93 = vst [vmem:[#allocation7] sm:$0xff] %v92_v19 }
  0xac   :  { %104 = dma.vmem_to_hbm [thread:$0]  %s100_s25, 128, %s102_s28, [#allocation4]  }
  0xad   :  { %194 = dma.done.wait [#allocation4], 128  }
  0xae   :  { %195 = vsyncadd [#allocation4], 4294967168 }
  0xaf   :  { %109 = vsyncpa [#allocation3], 1 }
  0xb0   :  { %110 = vsyncpa [#allocation6], 1 }
  0xb1   :  { %111 = vsyncpa [#allocation4], 1 }

</bundles_post_ra>
